<compile_context>
chip_gen: v5e
topology: v5e:2x2
jax: 0.10.0
libtpu: 0.0.40
codegen_flags: <defaults>
</compile_context>

<pallas_src>
import jax
import jax.numpy as jnp
from jax.experimental import pallas as pl
from jax.experimental.pallas import tpu as pltpu


def _mlp_kernel(x_ref, *refs):
    """Fused MLP chain on one lane tile.

    x_ref:   [seq_len, TN]     (features on sublanes, B*C on lanes)
    refs  =  (w0, b0, w1, b1, ..., wL, bL, out_ref)
      w_i:   [out_i, in_i]     (PyTorch nn.Linear layout -> no transposes)
      b_i:   [out_i, 1]        (broadcasts over the lane axis)
    out_ref: [pred_len, TN]
    Every layer except the last is followed by ReLU (matches create_MLP_modules).
    """
    out_ref = refs[-1]
    param_refs = refs[:-1]
    n_layers = len(param_refs) // 2

    h = x_ref[...]  # [seq_len, TN]
    for li in range(n_layers):
        w = param_refs[2 * li][...]      # [out, in]
        b = param_refs[2 * li + 1][...]  # [out, 1]
        # [out, in] @ [in, TN] -> [out, TN], f32 accumulation on the MXU.
        h = jnp.dot(w, h, preferred_element_type=jnp.float32) + b
        if li < n_layers - 1:
            h = jnp.maximum(h, 0.0)  # ReLU
    out_ref[...] = h.astype(out_ref.dtype)


def _default_lane_tile(n):
    """Pick the lane-tile width for the B*C axis."""
    # Tiny problems: one grid step, whole-array blocks -> zero pipeline overhead.
    if n <= 512:
        return n
    # Lane-dense tiles (multiple of 256), sized so the grid has >= 2 steps
    # (keeps both v7x TensorCores busy) while amortizing ~0.35us/step overhead.
    for t in (2048, 1024, 512, 256):
        if n >= 2 * t:
            return t
    return 256


def mlp_forward(x, weights, biases, *, lane_tile=None):
    """x: [B, seq_len, C]; weights[i]: [out_i, in_i]; biases[i]: [out_i].

    Returns [B, pred_len, C] (== PyTorch out.permute(0, 2, 1)).
    """
    B, S, C = x.shape
    pred_len = weights[-1].shape[0]
    N = B * C

    # [B, S, C] -> [S, B, C] -> [S, B*C]: seq features on sublanes, B*C on lanes.
    x2 = jnp.transpose(x, (1, 0, 2)).reshape(S, N)

    if lane_tile is None:
        lane_tile = _default_lane_tile(N)

    if lane_tile >= N:
        tn = N               # whole-array block; no 128-alignment requirement
        n_pad = N
    else:
        tn = max(128, (lane_tile // 128) * 128)   # tiled blocks must be 128-aligned
        n_pad = pl.cdiv(N, tn) * tn

    if n_pad > N:
        x2 = jnp.pad(x2, ((0, 0), (0, n_pad - N)))

    grid = (n_pad // tn,)

    flat_params = []
    for w, b in zip(weights, biases):
        flat_params.append(w)                 # [out, in]
        flat_params.append(b.reshape(-1, 1))  # [out, 1] -> lane broadcast in-kernel

    in_specs = [pl.BlockSpec((S, tn), lambda i: (0, i))]
    for p in flat_params:
        # Constant index_map -> fetched once, resident in VMEM across the grid.
        in_specs.append(pl.BlockSpec(p.shape, lambda i: (0, 0)))

    itemsize = x.dtype.itemsize
    flops = 2 * n_pad * sum(w.shape[0] * w.shape[1] for w in weights)
    bytes_accessed = (
        x2.size * itemsize
        + pred_len * n_pad * itemsize
        + sum(p.size * p.dtype.itemsize for p in flat_params)
    )

    out2 = pl.pallas_call(
        _mlp_kernel,
        out_shape=jax.ShapeDtypeStruct((pred_len, n_pad), x.dtype),
        grid=grid,
        in_specs=in_specs,
        out_specs=pl.BlockSpec((pred_len, tn), lambda i: (0, i)),
        compiler_params=pltpu.CompilerParams(
            dimension_semantics=("parallel",),   # lane-tile axis: shard across TCs on v7x
            vmem_limit_bytes=32 * 1024 * 1024,   # v7x-safe explicit scoped-VMEM budget
        ),
        cost_estimate=pl.CostEstimate(
            flops=flops, transcendentals=0, bytes_accessed=bytes_accessed),
    )(x2, *flat_params)

    # [pred_len, N] -> [pred_len, B, C] -> [B, pred_len, C]
    out2 = out2[:, :N].reshape(pred_len, B, C)
    return jnp.transpose(out2, (1, 0, 2))


def _init_params(key, seq_len, hid_len, pred_len, hid_layers):
    """Deterministic nn.Linear-style init.  Weights in PyTorch [out, in] layout."""
    dims = [seq_len] + [hid_len] * (hid_layers + 1) + [pred_len]
    weights, biases = [], []
    for i in range(len(dims) - 1):
        fan_in, fan_out = dims[i], dims[i + 1]
        key, kw, kb = jax.random.split(key, 3)
        bound = 1.0 / (fan_in ** 0.5)
        weights.append(jax.random.uniform(kw, (fan_out, fan_in), jnp.float32,
                                          minval=-bound, maxval=bound))
        biases.append(jax.random.uniform(kb, (fan_out,), jnp.float32,
                                         minval=-bound, maxval=bound))
    return weights, biases


def _reference(x, weights, biases):
    """Pure-JAX reference mirroring the PyTorch forward (individual=False)."""
    h = jnp.transpose(x, (0, 2, 1))  # [B, C, seq_len]
    n = len(weights)
    for i, (w, b) in enumerate(zip(weights, biases)):
        h = h @ w.T + b
        if i < n - 1:
            h = jnp.maximum(h, 0.0)
    return jnp.transpose(h, (0, 2, 1))  # [B, pred_len, C]


if __name__ == "__main__":
    # configs: seq_len=16, pred_len=8, hid_len=32, hid_layers=2, enc_in=4,
    #          individual=False
    B, SEQ_LEN, CHANNELS = 2, 16, 4
    PRED_LEN, HID_LEN, HID_LAYERS = 8, 32, 2

    key = jax.random.PRNGKey(0)
    key, kx = jax.random.split(key)
    x = jax.random.normal(kx, (B, SEQ_LEN, CHANNELS), jnp.float32)

    weights, biases = _init_params(key, SEQ_LEN, HID_LEN, PRED_LEN, HID_LAYERS)

    # Small config: exercises the single-step whole-array-block path.
    out = mlp_forward(x, weights, biases)
    out = jax.block_until_ready(out)
    ref = _reference(x, weights, biases)
    assert out.shape == (B, PRED_LEN, CHANNELS), out.shape
    assert jnp.allclose(out, ref, atol=1e-5, rtol=1e-5), "mismatch vs reference"

    # Larger batch: exercises the lane-dense tiled path (grid > 1, padding).
    key, kx2 = jax.random.split(key)
    x_big = jax.random.normal(kx2, (300, SEQ_LEN, CHANNELS), jnp.float32)  # B*C = 1200
    out_big = jax.block_until_ready(mlp_forward(x_big, weights, biases))
    ref_big = _reference(x_big, weights, biases)
    assert out_big.shape == (300, PRED_LEN, CHANNELS), out_big.shape
    assert jnp.allclose(out_big, ref_big, atol=1e-5, rtol=1e-5), "mismatch (tiled)"

    print("KERNEL_OK")
</pallas_src>

<mosaic_0001>
module attributes {stable_mosaic.version = 11 : i64} {
  func.func @_mlp_kernel(%arg0: i32, %arg1: memref<16x8xf32, #tpu.memory_space<vmem>>, %arg2: memref<32x16xf32, #tpu.memory_space<vmem>>, %arg3: memref<32x1xf32, #tpu.memory_space<vmem>>, %arg4: memref<32x32xf32, #tpu.memory_space<vmem>>, %arg5: memref<32x1xf32, #tpu.memory_space<vmem>>, %arg6: memref<32x32xf32, #tpu.memory_space<vmem>>, %arg7: memref<32x1xf32, #tpu.memory_space<vmem>>, %arg8: memref<8x32xf32, #tpu.memory_space<vmem>>, %arg9: memref<8x1xf32, #tpu.memory_space<vmem>>, %arg10: memref<8x8xf32, #tpu.memory_space<vmem>>) attributes {dimension_semantics = [#tpu.dimension_semantics<parallel>], iteration_bounds = array<i64: 1>, scalar_prefetch = 0 : i64, scratch_operands = 0 : i64, tpu.core_type = #tpu.core_type<tc>, window_params = [{transform_indices = @transform_0, window_bounds = array<i64: 16, 8>}, {pipeline_mode = #tpu.pipeline_mode<synchronous>, transform_indices = @transform_1, window_bounds = array<i64: 32, 16>}, {pipeline_mode = #tpu.pipeline_mode<synchronous>, transform_indices = @transform_2, window_bounds = array<i64: 32, 1>}, {pipeline_mode = #tpu.pipeline_mode<synchronous>, transform_indices = @transform_3, window_bounds = array<i64: 32, 32>}, {pipeline_mode = #tpu.pipeline_mode<synchronous>, transform_indices = @transform_4, window_bounds = array<i64: 32, 1>}, {pipeline_mode = #tpu.pipeline_mode<synchronous>, transform_indices = @transform_5, window_bounds = array<i64: 32, 32>}, {pipeline_mode = #tpu.pipeline_mode<synchronous>, transform_indices = @transform_6, window_bounds = array<i64: 32, 1>}, {pipeline_mode = #tpu.pipeline_mode<synchronous>, transform_indices = @transform_7, window_bounds = array<i64: 8, 32>}, {pipeline_mode = #tpu.pipeline_mode<synchronous>, transform_indices = @transform_8, window_bounds = array<i64: 8, 1>}, {transform_indices = @transform_9, window_bounds = array<i64: 8, 8>}]} {
    %c0 = arith.constant 0 : index
    %c0_0 = arith.constant 0 : index
    %0 = vector.load %arg1[%c0, %c0_0] : memref<16x8xf32, #tpu.memory_space<vmem>>, vector<16x8xf32>
    %c0_1 = arith.constant 0 : index
    %c0_2 = arith.constant 0 : index
    %1 = vector.load %arg2[%c0_1, %c0_2] : memref<32x16xf32, #tpu.memory_space<vmem>>, vector<32x16xf32>
    %c0_3 = arith.constant 0 : index
    %c0_4 = arith.constant 0 : index
    %2 = vector.load %arg3[%c0_3, %c0_4] : memref<32x1xf32, #tpu.memory_space<vmem>>, vector<32x1xf32>
    %cst = arith.constant dense<0.000000e+00> : vector<32x8xf32>
    %3 = tpu.matmul %1, %0, %cst {dimension_numbers = #tpu.dot_dimension_numbers<[1], [0], [0], [1], [0, 0, 1, 1], [], []>} : vector<32x16xf32>, vector<16x8xf32>, vector<32x8xf32> -> vector<32x8xf32>
    %4 = vector.broadcast %2 : vector<32x1xf32> to vector<32x8xf32>
    %5 = arith.addf %3, %4 : vector<32x8xf32>
    %cst_5 = arith.constant 0.000000e+00 : f32
    %6 = vector.broadcast %cst_5 : f32 to vector<32x8xf32>
    %7 = arith.maximumf %5, %6 : vector<32x8xf32>
    %c0_6 = arith.constant 0 : index
    %c0_7 = arith.constant 0 : index
    %8 = vector.load %arg4[%c0_6, %c0_7] : memref<32x32xf32, #tpu.memory_space<vmem>>, vector<32x32xf32>
    %c0_8 = arith.constant 0 : index
    %c0_9 = arith.constant 0 : index
    %9 = vector.load %arg5[%c0_8, %c0_9] : memref<32x1xf32, #tpu.memory_space<vmem>>, vector<32x1xf32>
    %cst_10 = arith.constant dense<0.000000e+00> : vector<32x8xf32>
    %10 = tpu.matmul %8, %7, %cst_10 {dimension_numbers = #tpu.dot_dimension_numbers<[1], [0], [0], [1], [0, 0, 1, 1], [], []>} : vector<32x32xf32>, vector<32x8xf32>, vector<32x8xf32> -> vector<32x8xf32>
    %11 = vector.broadcast %9 : vector<32x1xf32> to vector<32x8xf32>
    %12 = arith.addf %10, %11 : vector<32x8xf32>
    %cst_11 = arith.constant 0.000000e+00 : f32
    %13 = vector.broadcast %cst_11 : f32 to vector<32x8xf32>
    %14 = arith.maximumf %12, %13 : vector<32x8xf32>
    %c0_12 = arith.constant 0 : index
    %c0_13 = arith.constant 0 : index
    %15 = vector.load %arg6[%c0_12, %c0_13] : memref<32x32xf32, #tpu.memory_space<vmem>>, vector<32x32xf32>
    %c0_14 = arith.constant 0 : index
    %c0_15 = arith.constant 0 : index
    %16 = vector.load %arg7[%c0_14, %c0_15] : memref<32x1xf32, #tpu.memory_space<vmem>>, vector<32x1xf32>
    %cst_16 = arith.constant dense<0.000000e+00> : vector<32x8xf32>
    %17 = tpu.matmul %15, %14, %cst_16 {dimension_numbers = #tpu.dot_dimension_numbers<[1], [0], [0], [1], [0, 0, 1, 1], [], []>} : vector<32x32xf32>, vector<32x8xf32>, vector<32x8xf32> -> vector<32x8xf32>
    %18 = vector.broadcast %16 : vector<32x1xf32> to vector<32x8xf32>
    %19 = arith.addf %17, %18 : vector<32x8xf32>
    %cst_17 = arith.constant 0.000000e+00 : f32
    %20 = vector.broadcast %cst_17 : f32 to vector<32x8xf32>
    %21 = arith.maximumf %19, %20 : vector<32x8xf32>
    %c0_18 = arith.constant 0 : index
    %c0_19 = arith.constant 0 : index
    %22 = vector.load %arg8[%c0_18, %c0_19] : memref<8x32xf32, #tpu.memory_space<vmem>>, vector<8x32xf32>
    %c0_20 = arith.constant 0 : index
    %c0_21 = arith.constant 0 : index
    %23 = vector.load %arg9[%c0_20, %c0_21] : memref<8x1xf32, #tpu.memory_space<vmem>>, vector<8x1xf32>
    %cst_22 = arith.constant dense<0.000000e+00> : vector<8x8xf32>
    %24 = tpu.matmul %22, %21, %cst_22 {dimension_numbers = #tpu.dot_dimension_numbers<[1], [0], [0], [1], [0, 0, 1, 1], [], []>} : vector<8x32xf32>, vector<32x8xf32>, vector<8x8xf32> -> vector<8x8xf32>
    %25 = vector.broadcast %23 : vector<8x1xf32> to vector<8x8xf32>
    %26 = arith.addf %24, %25 : vector<8x8xf32>
    %c0_23 = arith.constant 0 : index
    %c0_24 = arith.constant 0 : index
    %27 = vector.load %arg10[%c0_23, %c0_24] : memref<8x8xf32, #tpu.memory_space<vmem>>, vector<8x8xf32>
    tpu.vector_store %arg10[%c0_23, %c0_24], %26 {strides = array<i32>} : memref<8x8xf32, #tpu.memory_space<vmem>>, vector<8x8xf32>,
    return
  }
  func.func @transform_0(%arg0: i32) -> (i32, i32) {
    %c0_i32 = arith.constant 0 : i32
    %c0_i32_0 = arith.constant 0 : i32
    return %c0_i32, %arg0 : i32, i32
  }
  func.func @transform_1(%arg0: i32) -> (i32, i32) {
    %c0_i32 = arith.constant 0 : i32
    %c0_i32_0 = arith.constant 0 : i32
    %c0_i32_1 = arith.constant 0 : i32
    return %c0_i32, %c0_i32_0 : i32, i32
  }
  func.func @transform_2(%arg0: i32) -> (i32, i32) {
    %c0_i32 = arith.constant 0 : i32
    %c0_i32_0 = arith.constant 0 : i32
    %c0_i32_1 = arith.constant 0 : i32
    return %c0_i32, %c0_i32_0 : i32, i32
  }
  func.func @transform_3(%arg0: i32) -> (i32, i32) {
    %c0_i32 = arith.constant 0 : i32
    %c0_i32_0 = arith.constant 0 : i32
    %c0_i32_1 = arith.constant 0 : i32
    return %c0_i32, %c0_i32_0 : i32, i32
  }
  func.func @transform_4(%arg0: i32) -> (i32, i32) {
    %c0_i32 = arith.constant 0 : i32
    %c0_i32_0 = arith.constant 0 : i32
    %c0_i32_1 = arith.constant 0 : i32
    return %c0_i32, %c0_i32_0 : i32, i32
  }
  func.func @transform_5(%arg0: i32) -> (i32, i32) {
    %c0_i32 = arith.constant 0 : i32
    %c0_i32_0 = arith.constant 0 : i32
    %c0_i32_1 = arith.constant 0 : i32
    return %c0_i32, %c0_i32_0 : i32, i32
  }
  func.func @transform_6(%arg0: i32) -> (i32, i32) {
    %c0_i32 = arith.constant 0 : i32
    %c0_i32_0 = arith.constant 0 : i32
    %c0_i32_1 = arith.constant 0 : i32
    return %c0_i32, %c0_i32_0 : i32, i32
  }
  func.func @transform_7(%arg0: i32) -> (i32, i32) {
    %c0_i32 = arith.constant 0 : i32
    %c0_i32_0 = arith.constant 0 : i32
    %c0_i32_1 = arith.constant 0 : i32
    return %c0_i32, %c0_i32_0 : i32, i32
  }
  func.func @transform_8(%arg0: i32) -> (i32, i32) {
    %c0_i32 = arith.constant 0 : i32
    %c0_i32_0 = arith.constant 0 : i32
    %c0_i32_1 = arith.constant 0 : i32
    return %c0_i32, %c0_i32_0 : i32, i32
  }
  func.func @transform_9(%arg0: i32) -> (i32, i32) {
    %c0_i32 = arith.constant 0 : i32
    %c0_i32_0 = arith.constant 0 : i32
    return %c0_i32, %arg0 : i32, i32
  }
}

</mosaic_0001>

<bundles_post_ra>
// kernel: tpu_custom_call.1
= control target key start
LH: loop header
LB: loop body
LE: loop exit
PB: predicated region body
PF: predicated region fallthrough
CT: control target
= control target key end

     0   :  { %v348_v3 = vmov 0   ;;  %vm63_vm0 = vcmask 130048   ;;  %s500_s0 = inlined_call_operand.vmem [shape: f32[16,8], index: 0, kind: input, shape index: {}]   ;;  %s501_s1 = inlined_call_operand.vmem [shape: f32[32,16], index: 1, kind: input, shape index: {}]   ;;  %s502_s2 = inlined_call_operand.vmem [shape: f32[32,1], index: 2, kind: input, shape index: {}]   ;;  %s503_s3 = inlined_call_operand.vmem [shape: f32[32,32], index: 3, kind: input, shape index: {}]   ;;  %s504_s4 = inlined_call_operand.vmem [shape: f32[32,1], index: 4, kind: input, shape index: {}]   ;;  %s505_s5 = inlined_call_operand.vmem [shape: f32[32,32], index: 5, kind: input, shape index: {}]   ;;  %s506_s6 = inlined_call_operand.vmem [shape: f32[32,1], index: 6, kind: input, shape index: {}]   ;;  %s507_s7 = inlined_call_operand.vmem [shape: f32[8,32], index: 7, kind: input, shape index: {}]   ;;  %s508_s8 = inlined_call_operand.vmem [shape: f32[8,1], index: 8, kind: input, shape index: {}]   ;;  %s509_s9 = inlined_call_operand.hbm [shape: f32[8,8], index: 9, kind: output, shape index: {}]  }
   0x1   :  { %v34_v0 = vld [vmem:[%s500_s0 + $0x8] sm:$0xff]  ;;  %v42_v1 = vld [vmem:[%s502_s2 + $0x18] sm:$0xff]  ;;  %v33_v2 = vld [vmem:[%s500_s0] sm:$0xff]  ;;  %319 = vset.pattern.permute.xlu0 %v348_v3  ;;  %320 = vset.pattern.permute.xlu1 %v348_v3 }
   0x2   :  { %90 = vmatpush.msra.mxu0 %v34_v0  ;;  %v35_v4 = vld [vmem:[%s501_s1] sm:$0xff]  ;;  %v40_v5 = vld [vmem:[%s502_s2 + $0x8] sm:$0xff]  ;;  %60 = vperm.xlu0 %319, %v42_v1  }
   0x3   :  { %50 = vperm.xlu1 %320, %v40_v5   ;;  %321 = vset.pattern.permute.xlu2 %v348_v3 }
   0x4   :  { %91 = vmatpush.msra.mxu0 %v33_v2 }
   0x5   :  { %304 = vmatmul.msk.f32.vlgmr.msra.gmra.mxu0 %vm63_vm0, %v35_v4 }
   0x6   :  { %14 = vsyncpa [#allocation3], 0  ;;  %v41_v6 = vld [vmem:[%s502_s2 + $0x10] sm:$0xff]  ;;  %v39_v7 = vld [vmem:[%s502_s2] sm:$0xff]  ;;  %vm137_vm1 = vcmask 261120   ;;  %s349_s13 = smov [#allocation2]  }
   0x7   :  { %v36_v8 = vld [vmem:[%s501_s1 + $0x8] sm:$0xff]  ;;  %v113_v10 = vld [vmem:[%s504_s4] sm:$0xff]  ;;  %v37_v11 = vld [vmem:[%s501_s1 + $0x10] sm:$0xff]  ;;  %s293_s14 = sshll.u32 %s349_s13, 4  ;;  %s295_s16 = sshll.u32 %s509_s9, 4  ;;  %vm286_vm2 = vcmask 64512   ;;  %s294_s14 = int_to_ptr.vmem [resolvable:$true] %s293_s14  ;;  %s296_s16 = int_to_ptr.hbm [resolvable:$true] %s295_s16 }
   0x8   :  { %v114_v9 = vld [vmem:[%s504_s4 + $0x8] sm:$0xff]  ;;  %v189_v12 = vld [vmem:[%s506_s6 + $0x10] sm:$0xff]  ;;  %v38_v14 = vld [vmem:[%s501_s1 + $0x18] sm:$0xff] }
   0x9   :  { %v188_v13 = vld [vmem:[%s506_s6 + $0x8] sm:$0xff]  ;;  %v257_v15 = vld [vmem:[%s508_s8] sm:$0xff]  ;;  %v116_v28 = vld [vmem:[%s504_s4 + $0x18] sm:$0xff] }
   0xa   :  { %55 = vperm.xlu0 %319, %v41_v6   ;;  %134 = vperm.xlu2 %321, %v116_v28   ;;  %v109_v33 = vld [vmem:[%s503_s3] sm:$0xff]  ;;  %v115_v34 = vld [vmem:[%s504_s4 + $0x10] sm:$0xff]  ;;  %v110_v35 = vld [vmem:[%s503_s3 + $0x8] sm:$0xff] }
   0xb   :  { %45 = vperm.xlu1 %320, %v39_v7   ;;  %v190_v36 = vld [vmem:[%s506_s6 + $0x18] sm:$0xff]  ;;  %v111_v37 = vld [vmem:[%s503_s3 + $0x10] sm:$0xff]  ;;  %v187_v38 = vld [vmem:[%s506_s6] sm:$0xff] }
   0xc   :  { %v112_v39 = vld [vmem:[%s503_s3 + $0x18] sm:$0xff]  ;;  %v183_v56 = vld [vmem:[%s505_s5] sm:$0xff]  ;;  %v184_v57 = vld [vmem:[%s505_s5 + $0x8] sm:$0xff] }
   0xd   :  { %305 = vmatmul.msk.f32.gmra.mxu0 %vm63_vm0, %v36_v8  ;;  %v185_v58 = vld [vmem:[%s505_s5 + $0x10] sm:$0xff]  ;;  %v186_v59 = vld [vmem:[%s505_s5 + $0x18] sm:$0xff] }
  0x12   :  { %124 = vperm.xlu0 %319, %v114_v9   ;;  %129 = vperm.xlu2 %321, %v115_v34  }
  0x13   :  { %119 = vperm.xlu1 %320, %v113_v10  }
  0x15   :  { %306 = vmatmul.msk.f32.gmra.mxu0 %vm63_vm0, %v37_v11 }
  0x1a   :  { %203 = vperm.xlu0 %319, %v189_v12   ;;  %208 = vperm.xlu2 %321, %v190_v36   ;;  %v256_v12 = vld [vmem:[%s507_s7] sm:$0xff] }
  0x1b   :  { %198 = vperm.xlu1 %320, %v188_v13  }
  0x1d   :  { %307 = vmatmul.msk.f32.gmra.mxu0 %vm63_vm0, %v38_v14 }
  0x22   :  { %260 = vperm.xlu0 %319, %v257_v15   ;;  %193 = vperm.xlu2 %321, %v187_v38  }
  0x64   :  { %v135_v42 = vpop.permute.xlu2 %134 }
  0x6c   :  { %v130_v44 = vpop.permute.xlu2 %129 }
  0x74   :  { %v61_v18 = vpop.permute.xlu0 %60  ;;  %v209_v63 = vpop.permute.xlu2 %208 }
  0x75   :  { %v51_v19 = vpop.permute.xlu1 %50 }
  0x7c   :  { %v56_v21 = vpop.permute.xlu0 %55  ;;  %v194_v7 = vpop.permute.xlu2 %193 }
  0x7d   :  { %v46_v25 = vpop.permute.xlu1 %45 }
  0x82   :  { %v93_v16 = vpop.f32.mrf.mxu0 }
  0x83   :  { %v94_v29 = vadd.f32 %v93_v16, %v46_v25 }
  0x84   :  { %v125_v48 = vpop.permute.xlu0 %124 }
  0x85   :  { %v105_v32 = vmax.f32 %v94_v29, 0.0  ;;  %v120_v51 = vpop.permute.xlu1 %119 }
  0x8a   :  { %v96_v17 = vpop.f32.mrf.mxu0 }
  0x8b   :  { %v97_v26 = vadd.f32 %v96_v17, %v51_v19 }
  0x8c   :  { %v204_v0 = vpop.permute.xlu0 %203 }
  0x8d   :  { %v106_v31 = vmax.f32 %v97_v26, 0.0  ;;  %v199_v4 = vpop.permute.xlu1 %198 }
  0x92   :  { %v99_v20 = vpop.f32.mrf.mxu0 }
  0x93   :  { %v100_v23 = vadd.f32 %v99_v20, %v56_v21 }
  0x94   :  { %v261_v13 = vpop.permute.xlu0 %260 }
  0x95   :  { %v107_v30 = vmax.f32 %v100_v23, 0.0 }
  0x9a   :  { %v102_v22 = vpop.f32.mrf.mxu0 }
  0x9b   :  { %v103_v24 = vadd.f32 %v102_v22, %v61_v18 }
  0x9d   :  { %v108_v27 = vmax.f32 %v103_v24, 0.0 }
  0x9f   :  { %162 = vmatpush.msra.mxu1 %v108_v27 }
  0xa1   :  { %163 = vmatpush.msra.mxu1 %v107_v30 }
  0xa3   :  { %164 = vmatpush.msra.mxu1 %v106_v31 }
  0xa5   :  { %165 = vmatpush.msra.mxu1 %v105_v32 }
  0xa6   :  { %308 = vmatmul.msk.f32.vlgmr.msra.gmra.mxu1 %vm137_vm1, %v109_v33 }
  0xae   :  { %309 = vmatmul.msk.f32.gmra.mxu1 %vm137_vm1, %v110_v35 }
  0xb6   :  { %310 = vmatmul.msk.f32.gmra.mxu1 %vm137_vm1, %v111_v37 }
  0xbe   :  { %311 = vmatmul.msk.f32.gmra.mxu1 %vm137_vm1, %v112_v39 }
 0x123   :  { %v167_v40 = vpop.f32.mrf.mxu1 }
 0x124   :  { %v168_v52 = vadd.f32 %v167_v40, %v120_v51 }
 0x126   :  { %v179_v55 = vmax.f32 %v168_v52, 0.0 }
 0x12b   :  { %v170_v41 = vpop.f32.mrf.mxu1 }
 0x12c   :  { %v171_v49 = vadd.f32 %v170_v41, %v125_v48 }
 0x12e   :  { %v180_v54 = vmax.f32 %v171_v49, 0.0 }
 0x133   :  { %v173_v43 = vpop.f32.mrf.mxu1 }
 0x134   :  { %v174_v46 = vadd.f32 %v173_v43, %v130_v44 }
 0x136   :  { %v181_v53 = vmax.f32 %v174_v46, 0.0 }
 0x13b   :  { %v176_v45 = vpop.f32.mrf.mxu1 }
 0x13c   :  { %v177_v47 = vadd.f32 %v176_v45, %v135_v42 }
 0x13e   :  { %v182_v50 = vmax.f32 %v177_v47, 0.0 }
 0x140   :  { %235 = vmatpush.msra.mxu2 %v182_v50 }
 0x142   :  { %236 = vmatpush.msra.mxu2 %v181_v53 }
 0x144   :  { %237 = vmatpush.msra.mxu2 %v180_v54 }
 0x146   :  { %238 = vmatpush.msra.mxu2 %v179_v55 }
 0x147   :  { %312 = vmatmul.msk.f32.vlgmr.msra.gmra.mxu2 %vm137_vm1, %v183_v56 }
 0x14f   :  { %313 = vmatmul.msk.f32.gmra.mxu2 %vm137_vm1, %v184_v57 }
 0x157   :  { %314 = vmatmul.msk.f32.gmra.mxu2 %vm137_vm1, %v185_v58 }
 0x15f   :  { %315 = vmatmul.msk.f32.gmra.mxu2 %vm137_vm1, %v186_v59 }
 0x1ca   :  { %v240_v60 = vpop.f32.mrf.mxu2 }
 0x1cb   :  { %v241_v8 = vadd.f32 %v240_v60, %v194_v7 }
 0x1cd   :  { %v252_v11 = vmax.f32 %v241_v8, 0.0 }
 0x1d2   :  { %v243_v61 = vpop.f32.mrf.mxu2 }
 0x1d3   :  { %v244_v5 = vadd.f32 %v243_v61, %v199_v4 }
 0x1d5   :  { %v253_v10 = vmax.f32 %v244_v5, 0.0 }
 0x1da   :  { %v246_v62 = vpop.f32.mrf.mxu2 }
 0x1db   :  { %v247_v2 = vadd.f32 %v246_v62, %v204_v0 }
 0x1dd   :  { %v254_v9 = vmax.f32 %v247_v2, 0.0 }
 0x1e2   :  { %v249_v1 = vpop.f32.mrf.mxu2 }
 0x1e3   :  { %v250_v3 = vadd.f32 %v249_v1, %v209_v63 }
 0x1e5   :  { %v255_v6 = vmax.f32 %v250_v3, 0.0 }
 0x1e7   :  { %278 = vmatpush.msra.mxu3 %v255_v6 }
 0x1e9   :  { %279 = vmatpush.msra.mxu3 %v254_v9 }
 0x1eb   :  { %280 = vmatpush.msra.mxu3 %v253_v10 }
 0x1ed   :  { %281 = vmatpush.msra.mxu3 %v252_v11 }
 0x1ee   :  { %316 = vmatmul.msk.f32.vlgmr.msra.gmra.mxu3 %vm137_vm1, %v256_v12 }
 0x271   :  { %v283_v14 = vpop.f32.mrf.mxu3 }
 0x272   :  { %v284_v15 = vadd.f32 %v283_v14, %v261_v13 }
 0x274   :  { %287 = vst.msk [vmem:[#allocation2] sm:$0xff] %vm286_vm2, %v284_v15 }
 0x275   :  { %298 = dma.vmem_to_hbm [thread:$0]  %s294_s14, 128, %s296_s16, [#allocation3]  }
 0x276   :  { %346 = dma.done.wait [#allocation3], 128  }
 0x277   :  { %347 = vsyncadd [#allocation3], 4294967168 }
 0x278   :  { %303 = vsyncpa [#allocation3], 1 }

</bundles_post_ra>
